<compile_context>
chip_gen: v7x
topology: tpu7x:2x2x1
jax: 0.10.0
libtpu: 0.0.40
codegen_flags: <defaults>
</compile_context>

<pallas_src>
import functools

import jax
import jax.numpy as jnp
from jax import lax
from jax.experimental import pallas as pl
from jax.experimental.pallas import tpu as pltpu


# ----------------------------------- the kernel ------------------------------------

def _rtb_kernel(x_ref, tm_ref, w1_ref, w2_ref, wr_ref, vec_ref, amat_ref, o_ref, *,
                kernel_size, n_groups, fast):
    f32 = jnp.float32
    cdt = jnp.bfloat16 if fast else jnp.float32          # matmul input dtype

    x = x_ref[...].astype(f32)                           # (C_in, H)  one trajectory
    c_in, H = x.shape
    c_out = o_ref.shape[0]
    cg = c_out // n_groups
    pad = kernel_size // 2
    inv_n = 1.0 / float(cg * H)

    a_mat = amat_ref[...]                                # (C_out, C_out) group membership, f32
    tmb = tm_ref[...].astype(f32)                        # (C_out, 1) hoisted time embedding

    lane = lax.broadcasted_iota(jnp.int32, (1, H), 1)    # lane position within the trajectory

    def mish(v):
        # mish(v) = v * tanh(softplus(v)) = v * (u^2 - 1) / (u^2 + 1),  u = 1 + exp(v)
        u = 1.0 + jnp.exp(jnp.minimum(v, 20.0))          # clamp avoids inf/inf -> NaN
        u2 = u * u
        if fast:
            return v * (u2 - 1.0) * pl.reciprocal(u2 + 1.0, approx=True)   # EUP slot
        return v * (u2 - 1.0) / (u2 + 1.0)

    use_roll = (H % 128 == 0)

    def im2col(v):
        # v: (C, H) f32 -> (K*C, H) in the matmul dtype; tap k reads v[:, l + (k - pad)],
        # zero outside [0, H) ("same" zero padding).
        if use_roll:
            cols = []
            for k in range(kernel_size):
                s = k - pad
                shifted = v if s == 0 else pltpu.roll(v, shift=(-s) % H, axis=1)
                valid = jnp.logical_and(lane + s >= 0, lane + s < H)
                cols.append(jnp.where(valid, shifted, 0.0))
        else:
            z = jnp.zeros((v.shape[0], pad), f32)
            vp = jnp.concatenate([z, v, z], axis=1)       # (C, H + 2*pad)
            cols = [vp[:, k:k + H] for k in range(kernel_size)]
        return jnp.concatenate(cols, axis=0).astype(cdt)  # (K*C, H)

    def gn_affine(y, gamma, beta, eps=1e-5):
        # per-channel GroupNorm affine for this trajectory: scale/shift with shape (C, 1)
        s1 = jnp.sum(y, axis=-1, keepdims=True)           # (C, 1) lane reduce (XLU)
        s2 = jnp.sum(y * y, axis=-1, keepdims=True)       # (C, 1)
        mean = jnp.dot(a_mat, s1, preferred_element_type=f32) * inv_n
        ex2 = jnp.dot(a_mat, s2, preferred_element_type=f32) * inv_n
        inv = lax.rsqrt(ex2 - mean * mean + eps)
        scale = inv * gamma
        shift = beta - mean * scale
        return scale, shift

    # stacked per-channel parameter vectors: [b1, g1, be1, b2, g2, be2, br]
    b1, g1, be1 = vec_ref[:, 0:1], vec_ref[:, 1:2], vec_ref[:, 2:3]
    b2, g2, be2 = vec_ref[:, 3:4], vec_ref[:, 4:5], vec_ref[:, 5:6]
    br = vec_ref[:, 6:7]

    # ---- block 0: conv -> GroupNorm -> Mish, then + time embedding ----
    y0 = jnp.dot(w1_ref[...], im2col(x), preferred_element_type=f32) + b1      # (C_out, H)
    sc0, sh0 = gn_affine(y0, g1, be1)
    h = mish(y0 * sc0 + sh0) + tmb                                             # (C_out, H)

    # ---- block 1: conv -> GroupNorm -> Mish ----
    y1 = jnp.dot(w2_ref[...], im2col(h), preferred_element_type=f32) + b2      # (C_out, H)
    sc1, sh1 = gn_affine(y1, g2, be2)
    h2 = mish(y1 * sc1 + sh1)

    # ---- residual 1x1 conv ----
    res = jnp.dot(wr_ref[...], x.astype(cdt), preferred_element_type=f32) + br

    o_ref[...] = (h2 + res).astype(o_ref.dtype)


# ------------------------------------ wrapper ---------------------------------------

def residual_temporal_block(x, t, params, *, kernel_size=5, n_groups=8,
                            compute_dtype=jnp.bfloat16):
    """x: (B, C_in, H) f32, t: (B, E) f32 -> (B, C_out, H) f32.

    compute_dtype=bf16 runs the conv / residual GEMMs on the MXU in bf16 with f32 accumulation
    (GroupNorm stats always stay f32); compute_dtype=f32 is the exact/debug path.
    """
    batch, c_in, horizon = x.shape
    c_out = params["w1"].shape[0]
    assert c_out % n_groups == 0, "GroupNorm requires C_out % n_groups == 0"

    fast = (compute_dtype == jnp.bfloat16)
    wdt = jnp.bfloat16 if fast else jnp.float32

    # hoisted time MLP: Mish(t) @ Wt^T + bt, one batched XLA matmul -> (B, C_out, 1)
    sp = jnp.maximum(t, 0.0) + jnp.log1p(jnp.exp(-jnp.abs(t)))
    tm = (t * jnp.tanh(sp)) @ params["wt"].T + params["bt"][None, :]
    tm = tm.astype(jnp.float32)[:, :, None]                                    # (B, C_out, 1)

    # consolidate the seven (C_out,) parameter vectors into one (C_out, 7) block -> single DMA
    vecs = jnp.stack([params["b1"], params["g1"], params["be1"],
                      params["b2"], params["g2"], params["be2"],
                      params["br"]], axis=1).astype(jnp.float32)               # (C_out, 7)

    # group-membership matrix for the GroupNorm channel reduction (hoisted, fetched once)
    cg = c_out // n_groups
    ch = jnp.arange(c_out)
    a_mat = (ch[:, None] // cg == ch[None, :] // cg).astype(jnp.float32)       # (C_out, C_out)

    kern = functools.partial(_rtb_kernel, kernel_size=kernel_size,
                             n_groups=n_groups, fast=fast)

    # grid over batch (one trajectory per step): blocks' trailing dims equal the full array dims,
    # so any C/H is legal; per-step live set is a few MB -> default scoped VMEM is plenty on
    # v5e/v6e/v7x; grid=B >= 2 feeds both v7x TensorCores via "parallel".
    out = pl.pallas_call(
        kern,
        out_shape=jax.ShapeDtypeStruct((batch, c_out, horizon), x.dtype),
        grid=(batch,),
        in_specs=[
            pl.BlockSpec((None, c_in, horizon), lambda b: (b, 0, 0)),          # x
            pl.BlockSpec((None, c_out, 1), lambda b: (b, 0, 0)),               # time emb column
            pl.BlockSpec((c_out, kernel_size * c_in), lambda b: (0, 0)),       # w1 (im2col flat)
            pl.BlockSpec((c_out, kernel_size * c_out), lambda b: (0, 0)),      # w2 (im2col flat)
            pl.BlockSpec((c_out, c_in), lambda b: (0, 0)),                     # w_res
            pl.BlockSpec((c_out, 7), lambda b: (0, 0)),                        # stacked vectors
            pl.BlockSpec((c_out, c_out), lambda b: (0, 0)),                    # group membership
        ],
        out_specs=pl.BlockSpec((None, c_out, horizon), lambda b: (b, 0, 0)),
        compiler_params=pltpu.CompilerParams(dimension_semantics=("parallel",)),
    )(x, tm, params["w1"].astype(wdt), params["w2"].astype(wdt),
      params["wr"].astype(wdt), vecs, a_mat)

    return out


# -------------------------- pure-JAX reference (for checking) -----------------------

def _reference_forward(x, t, params, *, kernel_size=5, n_groups=8):
    K = kernel_size

    def conv(xb, w_flat, b):
        c_in, h = xb.shape
        c_out = w_flat.shape[0]
        w = w_flat.reshape(c_out, K, c_in)                 # columns ordered (k, c_in)
        pad = K // 2
        xp = jnp.pad(xb, ((0, 0), (pad, pad)))
        acc = sum(jnp.dot(w[:, k, :], xp[:, k:k + h]) for k in range(K))
        return acc + b[:, None]

    def gn(y, g, be, eps=1e-5):
        c, h = y.shape
        yg = y.reshape(n_groups, (c // n_groups) * h)
        mean = yg.mean(axis=1, keepdims=True)
        var = ((yg - mean) ** 2).mean(axis=1, keepdims=True)
        yn = ((yg - mean) / jnp.sqrt(var + eps)).reshape(c, h)
        return yn * g[:, None] + be[:, None]

    def mish(v):
        return v * jnp.tanh(jnp.maximum(v, 0.0) + jnp.log1p(jnp.exp(-jnp.abs(v))))

    outs = []
    for b in range(x.shape[0]):
        xb, tb = x[b], t[b]
        h1 = mish(gn(conv(xb, params["w1"], params["b1"]), params["g1"], params["be1"]))
        tm = jnp.dot(params["wt"], mish(tb)) + params["bt"]
        h2 = mish(gn(conv(h1 + tm[:, None], params["w2"], params["b2"]),
                     params["g2"], params["be2"]))
        res = jnp.dot(params["wr"], xb) + params["br"][:, None]
        outs.append(h2 + res)
    return jnp.stack(outs)


# --------------------------------------- main ---------------------------------------

if __name__ == "__main__":
    def build_params(key, c_in, c_out, e, k_sz):
        ks = jax.random.split(key, 12)

        def rnd(kk, shape, scale=0.1):
            return (scale * jax.random.normal(kk, shape)).astype(jnp.float32)

        p = {
            # conv weights stored im2col-flattened: (C_out, K*C_in), columns ordered (k, c_in)
            "w1": rnd(ks[0], (c_out, k_sz * c_in)),
            "b1": rnd(ks[1], (c_out,)),
            "g1": (1.0 + rnd(ks[2], (c_out,))).astype(jnp.float32),
            "be1": rnd(ks[3], (c_out,)),
            "wt": rnd(ks[4], (c_out, e)),
            "bt": rnd(ks[5], (c_out,)),
            "w2": rnd(ks[6], (c_out, k_sz * c_out)),
            "b2": rnd(ks[7], (c_out,)),
            "g2": (1.0 + rnd(ks[8], (c_out,))).astype(jnp.float32),
            "be2": rnd(ks[9], (c_out,)),
        }
        # residual conv: 1x1 conv if C_in != C_out, else identity expressed as eye weights
        if c_in != c_out:
            p["wr"] = rnd(ks[10], (c_out, c_in))
            p["br"] = rnd(ks[11], (c_out,))
        else:
            p["wr"] = jnp.eye(c_out, dtype=jnp.float32)
            p["br"] = jnp.zeros((c_out,), jnp.float32)
        return p

    key = jax.random.PRNGKey(0)
    k1, k2, k3, k4 = jax.random.split(key, 4)
    K, G = 5, 8

    # ---- test 1: small shapes (pad/slice im2col path), exact f32 and bf16 modes ----
    B, C_IN, C_OUT, E, H = 2, 8, 16, 32, 16
    params = build_params(k1, C_IN, C_OUT, E, K)
    x = jax.random.normal(k2, (B, C_IN, H), dtype=jnp.float32)
    t = jax.random.normal(k3, (B, E), dtype=jnp.float32)
    ref = _reference_forward(x, t, params, kernel_size=K, n_groups=G)

    out = jax.block_until_ready(residual_temporal_block(
        x, t, params, kernel_size=K, n_groups=G, compute_dtype=jnp.float32))
    assert out.shape == (B, C_OUT, H)
    assert jnp.allclose(out, ref, atol=2e-4, rtol=1e-3), "f32 mismatch vs reference"

    out_bf = jax.block_until_ready(residual_temporal_block(
        x, t, params, kernel_size=K, n_groups=G, compute_dtype=jnp.bfloat16))
    assert jnp.allclose(out_bf, ref, atol=5e-2, rtol=5e-2), "bf16 mismatch vs reference"

    # ---- test 2: lane-dense shapes (pltpu.roll im2col path, 128-lane horizon) ----
    B2, C_IN2, C_OUT2, E2, H2 = 2, 32, 64, 32, 128
    params2 = build_params(k4, C_IN2, C_OUT2, E2, K)
    x2 = jax.random.normal(jax.random.PRNGKey(7), (B2, C_IN2, H2), dtype=jnp.float32)
    t2 = jax.random.normal(jax.random.PRNGKey(8), (B2, E2), dtype=jnp.float32)
    ref2 = _reference_forward(x2, t2, params2, kernel_size=K, n_groups=G)

    out2_f32 = jax.block_until_ready(residual_temporal_block(
        x2, t2, params2, kernel_size=K, n_groups=G, compute_dtype=jnp.float32))
    assert out2_f32.shape == (B2, C_OUT2, H2)
    assert jnp.allclose(out2_f32, ref2, atol=1e-3, rtol=1e-3), "roll-path f32 mismatch"

    out2 = jax.block_until_ready(residual_temporal_block(
        x2, t2, params2, kernel_size=K, n_groups=G, compute_dtype=jnp.bfloat16))
    assert jnp.allclose(out2, ref2, atol=5e-2, rtol=5e-2), "roll-path bf16 mismatch"

    print("KERNEL_OK")
</pallas_src>

<mosaic_0001>
module attributes {stable_mosaic.version = 11 : i64} {
  func.func @_rtb_kernel(%arg0: i32, %arg1: memref<1x8x16xf32, #tpu.memory_space<vmem>>, %arg2: memref<1x16x1xf32, #tpu.memory_space<vmem>>, %arg3: memref<16x40xf32, #tpu.memory_space<vmem>>, %arg4: memref<16x80xf32, #tpu.memory_space<vmem>>, %arg5: memref<16x8xf32, #tpu.memory_space<vmem>>, %arg6: memref<16x7xf32, #tpu.memory_space<vmem>>, %arg7: memref<16x16xf32, #tpu.memory_space<vmem>>, %arg8: memref<1x16x16xf32, #tpu.memory_space<vmem>>) attributes {dimension_semantics = [#tpu.dimension_semantics<parallel>], iteration_bounds = array<i64: 2>, scalar_prefetch = 0 : i64, scratch_operands = 0 : i64, tpu.core_type = #tpu.core_type<tc>, window_params = [{transform_indices = @transform_0, window_bounds = array<i64: 1, 8, 16>}, {transform_indices = @transform_1, window_bounds = array<i64: 1, 16, 1>}, {pipeline_mode = #tpu.pipeline_mode<synchronous>, transform_indices = @transform_2, window_bounds = array<i64: 16, 40>}, {pipeline_mode = #tpu.pipeline_mode<synchronous>, transform_indices = @transform_3, window_bounds = array<i64: 16, 80>}, {pipeline_mode = #tpu.pipeline_mode<synchronous>, transform_indices = @transform_4, window_bounds = array<i64: 16, 8>}, {pipeline_mode = #tpu.pipeline_mode<synchronous>, transform_indices = @transform_5, window_bounds = array<i64: 16, 7>}, {pipeline_mode = #tpu.pipeline_mode<synchronous>, transform_indices = @transform_6, window_bounds = array<i64: 16, 16>}, {transform_indices = @transform_7, window_bounds = array<i64: 1, 16, 16>}]} {
    %c0 = arith.constant 0 : index
    %c0_0 = arith.constant 0 : index
    %c0_1 = arith.constant 0 : index
    %0 = vector.load %arg1[%c0, %c0_0, %c0_1] : memref<1x8x16xf32, #tpu.memory_space<vmem>>, vector<1x8x16xf32>
    %1 = vector.shape_cast %0 : vector<1x8x16xf32> to vector<8x16xf32>
    %c0_2 = arith.constant 0 : index
    %c0_3 = arith.constant 0 : index
    %2 = vector.load %arg7[%c0_2, %c0_3] : memref<16x16xf32, #tpu.memory_space<vmem>>, vector<16x16xf32>
    %c0_4 = arith.constant 0 : index
    %c0_5 = arith.constant 0 : index
    %c0_6 = arith.constant 0 : index
    %3 = vector.load %arg2[%c0_4, %c0_5, %c0_6] : memref<1x16x1xf32, #tpu.memory_space<vmem>>, vector<1x16x1xf32>
    %4 = vector.shape_cast %3 : vector<1x16x1xf32> to vector<16x1xf32>
    %c0_7 = arith.constant 0 : index
    %c0_8 = arith.constant 0 : index
    %5 = vector.load %arg6[%c0_7, %c0_8] : memref<16x7xf32, #tpu.memory_space<vmem>>, vector<16x1xf32>
    %c0_9 = arith.constant 0 : index
    %c1 = arith.constant 1 : index
    %6 = vector.load %arg6[%c0_9, %c1] : memref<16x7xf32, #tpu.memory_space<vmem>>, vector<16x1xf32>
    %c0_10 = arith.constant 0 : index
    %c2 = arith.constant 2 : index
    %7 = vector.load %arg6[%c0_10, %c2] : memref<16x7xf32, #tpu.memory_space<vmem>>, vector<16x1xf32>
    %c0_11 = arith.constant 0 : index
    %c3 = arith.constant 3 : index
    %8 = vector.load %arg6[%c0_11, %c3] : memref<16x7xf32, #tpu.memory_space<vmem>>, vector<16x1xf32>
    %c0_12 = arith.constant 0 : index
    %c4 = arith.constant 4 : index
    %9 = vector.load %arg6[%c0_12, %c4] : memref<16x7xf32, #tpu.memory_space<vmem>>, vector<16x1xf32>
    %c0_13 = arith.constant 0 : index
    %c5 = arith.constant 5 : index
    %10 = vector.load %arg6[%c0_13, %c5] : memref<16x7xf32, #tpu.memory_space<vmem>>, vector<16x1xf32>
    %c0_14 = arith.constant 0 : index
    %c6 = arith.constant 6 : index
    %11 = vector.load %arg6[%c0_14, %c6] : memref<16x7xf32, #tpu.memory_space<vmem>>, vector<16x1xf32>
    %c0_15 = arith.constant 0 : index
    %c0_16 = arith.constant 0 : index
    %12 = vector.load %arg3[%c0_15, %c0_16] : memref<16x40xf32, #tpu.memory_space<vmem>>, vector<16x40xf32>
    %cst = arith.constant 0.000000e+00 : f32
    %13 = vector.broadcast %cst : f32 to vector<8x2xf32>
    %14 = tpu.concatenate %13, %1, %13 in 1 : vector<8x2xf32>, vector<8x16xf32>, vector<8x2xf32> -> vector<8x20xf32>
    %15 = vector.extract_strided_slice %14 {offsets = [0, 0], sizes = [8, 16], strides = [1, 1]} : vector<8x20xf32> to vector<8x16xf32>
    %16 = vector.extract_strided_slice %14 {offsets = [0, 1], sizes = [8, 16], strides = [1, 1]} : vector<8x20xf32> to vector<8x16xf32>
    %17 = vector.extract_strided_slice %14 {offsets = [0, 2], sizes = [8, 16], strides = [1, 1]} : vector<8x20xf32> to vector<8x16xf32>
    %18 = vector.extract_strided_slice %14 {offsets = [0, 3], sizes = [8, 16], strides = [1, 1]} : vector<8x20xf32> to vector<8x16xf32>
    %19 = vector.extract_strided_slice %14 {offsets = [0, 4], sizes = [8, 16], strides = [1, 1]} : vector<8x20xf32> to vector<8x16xf32>
    %20 = tpu.concatenate %15, %16, %17, %18, %19 in 0 : vector<8x16xf32>, vector<8x16xf32>, vector<8x16xf32>, vector<8x16xf32>, vector<8x16xf32> -> vector<40x16xf32>
    %cst_17 = arith.constant dense<0.000000e+00> : vector<16x16xf32>
    %21 = tpu.matmul %12, %20, %cst_17 {dimension_numbers = #tpu.dot_dimension_numbers<[1], [0], [0], [1], [0, 0, 1, 1], [], []>} : vector<16x40xf32>, vector<40x16xf32>, vector<16x16xf32> -> vector<16x16xf32>
    %22 = vector.broadcast %5 : vector<16x1xf32> to vector<16x16xf32>
    %23 = arith.addf %21, %22 : vector<16x16xf32>
    %cst_18 = arith.constant dense<0.000000e+00> : vector<16xf32>
    %24 = vector.multi_reduction <add>, %23, %cst_18 [1] : vector<16x16xf32> to vector<16xf32>
    %25 = vector.shape_cast %24 : vector<16xf32> to vector<16x1xf32>
    %26 = arith.mulf %23, %23 : vector<16x16xf32>
    %cst_19 = arith.constant dense<0.000000e+00> : vector<16xf32>
    %27 = vector.multi_reduction <add>, %26, %cst_19 [1] : vector<16x16xf32> to vector<16xf32>
    %28 = vector.shape_cast %27 : vector<16xf32> to vector<16x1xf32>
    %cst_20 = arith.constant dense<0.000000e+00> : vector<16x1xf32>
    %29 = tpu.matmul %2, %25, %cst_20 {dimension_numbers = #tpu.dot_dimension_numbers<[1], [0], [0], [1], [0, 0, 1, 1], [], []>} : vector<16x16xf32>, vector<16x1xf32>, vector<16x1xf32> -> vector<16x1xf32>
    %cst_21 = arith.constant 3.125000e-02 : f32
    %30 = vector.broadcast %cst_21 : f32 to vector<16x1xf32>
    %31 = arith.mulf %29, %30 : vector<16x1xf32>
    %cst_22 = arith.constant dense<0.000000e+00> : vector<16x1xf32>
    %32 = tpu.matmul %2, %28, %cst_22 {dimension_numbers = #tpu.dot_dimension_numbers<[1], [0], [0], [1], [0, 0, 1, 1], [], []>} : vector<16x16xf32>, vector<16x1xf32>, vector<16x1xf32> -> vector<16x1xf32>
    %cst_23 = arith.constant 3.125000e-02 : f32
    %33 = vector.broadcast %cst_23 : f32 to vector<16x1xf32>
    %34 = arith.mulf %32, %33 : vector<16x1xf32>
    %35 = arith.mulf %31, %31 : vector<16x1xf32>
    %36 = arith.subf %34, %35 : vector<16x1xf32>
    %cst_24 = arith.constant 9.99999974E-6 : f32
    %37 = vector.broadcast %cst_24 : f32 to vector<16x1xf32>
    %38 = arith.addf %36, %37 : vector<16x1xf32>
    %39 = math.rsqrt %38 : vector<16x1xf32>
    %40 = arith.mulf %39, %6 : vector<16x1xf32>
    %41 = arith.mulf %31, %40 : vector<16x1xf32>
    %42 = arith.subf %7, %41 : vector<16x1xf32>
    %43 = vector.broadcast %40 : vector<16x1xf32> to vector<16x16xf32>
    %44 = arith.mulf %23, %43 : vector<16x16xf32>
    %45 = vector.broadcast %42 : vector<16x1xf32> to vector<16x16xf32>
    %46 = arith.addf %44, %45 : vector<16x16xf32>
    %cst_25 = arith.constant 2.000000e+01 : f32
    %47 = vector.broadcast %cst_25 : f32 to vector<16x16xf32>
    %48 = arith.minimumf %46, %47 : vector<16x16xf32>
    %49 = math.exp %48 : vector<16x16xf32>
    %cst_26 = arith.constant 1.000000e+00 : f32
    %50 = vector.broadcast %cst_26 : f32 to vector<16x16xf32>
    %51 = arith.addf %50, %49 : vector<16x16xf32>
    %52 = arith.mulf %51, %51 : vector<16x16xf32>
    %cst_27 = arith.constant 1.000000e+00 : f32
    %53 = vector.broadcast %cst_27 : f32 to vector<16x16xf32>
    %54 = arith.subf %52, %53 : vector<16x16xf32>
    %55 = arith.mulf %46, %54 : vector<16x16xf32>
    %cst_28 = arith.constant 1.000000e+00 : f32
    %56 = vector.broadcast %cst_28 : f32 to vector<16x16xf32>
    %57 = arith.addf %52, %56 : vector<16x16xf32>
    %58 = arith.divf %55, %57 : vector<16x16xf32>
    %59 = vector.broadcast %4 : vector<16x1xf32> to vector<16x16xf32>
    %60 = arith.addf %58, %59 : vector<16x16xf32>
    %c0_29 = arith.constant 0 : index
    %c0_30 = arith.constant 0 : index
    %61 = vector.load %arg4[%c0_29, %c0_30] : memref<16x80xf32, #tpu.memory_space<vmem>>, vector<16x80xf32>
    %cst_31 = arith.constant 0.000000e+00 : f32
    %62 = vector.broadcast %cst_31 : f32 to vector<16x2xf32>
    %63 = tpu.concatenate %62, %60, %62 in 1 : vector<16x2xf32>, vector<16x16xf32>, vector<16x2xf32> -> vector<16x20xf32>
    %64 = vector.extract_strided_slice %63 {offsets = [0, 0], sizes = [16, 16], strides = [1, 1]} : vector<16x20xf32> to vector<16x16xf32>
    %65 = vector.extract_strided_slice %63 {offsets = [0, 1], sizes = [16, 16], strides = [1, 1]} : vector<16x20xf32> to vector<16x16xf32>
    %66 = vector.extract_strided_slice %63 {offsets = [0, 2], sizes = [16, 16], strides = [1, 1]} : vector<16x20xf32> to vector<16x16xf32>
    %67 = vector.extract_strided_slice %63 {offsets = [0, 3], sizes = [16, 16], strides = [1, 1]} : vector<16x20xf32> to vector<16x16xf32>
    %68 = vector.extract_strided_slice %63 {offsets = [0, 4], sizes = [16, 16], strides = [1, 1]} : vector<16x20xf32> to vector<16x16xf32>
    %69 = tpu.concatenate %64, %65, %66, %67, %68 in 0 : vector<16x16xf32>, vector<16x16xf32>, vector<16x16xf32>, vector<16x16xf32>, vector<16x16xf32> -> vector<80x16xf32>
    %cst_32 = arith.constant dense<0.000000e+00> : vector<16x16xf32>
    %70 = tpu.matmul %61, %69, %cst_32 {dimension_numbers = #tpu.dot_dimension_numbers<[1], [0], [0], [1], [0, 0, 1, 1], [], []>} : vector<16x80xf32>, vector<80x16xf32>, vector<16x16xf32> -> vector<16x16xf32>
    %71 = vector.broadcast %8 : vector<16x1xf32> to vector<16x16xf32>
    %72 = arith.addf %70, %71 : vector<16x16xf32>
    %cst_33 = arith.constant dense<0.000000e+00> : vector<16xf32>
    %73 = vector.multi_reduction <add>, %72, %cst_33 [1] : vector<16x16xf32> to vector<16xf32>
    %74 = vector.shape_cast %73 : vector<16xf32> to vector<16x1xf32>
    %75 = arith.mulf %72, %72 : vector<16x16xf32>
    %cst_34 = arith.constant dense<0.000000e+00> : vector<16xf32>
    %76 = vector.multi_reduction <add>, %75, %cst_34 [1] : vector<16x16xf32> to vector<16xf32>
    %77 = vector.shape_cast %76 : vector<16xf32> to vector<16x1xf32>
    %cst_35 = arith.constant dense<0.000000e+00> : vector<16x1xf32>
    %78 = tpu.matmul %2, %74, %cst_35 {dimension_numbers = #tpu.dot_dimension_numbers<[1], [0], [0], [1], [0, 0, 1, 1], [], []>} : vector<16x16xf32>, vector<16x1xf32>, vector<16x1xf32> -> vector<16x1xf32>
    %cst_36 = arith.constant 3.125000e-02 : f32
    %79 = vector.broadcast %cst_36 : f32 to vector<16x1xf32>
    %80 = arith.mulf %78, %79 : vector<16x1xf32>
    %cst_37 = arith.constant dense<0.000000e+00> : vector<16x1xf32>
    %81 = tpu.matmul %2, %77, %cst_37 {dimension_numbers = #tpu.dot_dimension_numbers<[1], [0], [0], [1], [0, 0, 1, 1], [], []>} : vector<16x16xf32>, vector<16x1xf32>, vector<16x1xf32> -> vector<16x1xf32>
    %cst_38 = arith.constant 3.125000e-02 : f32
    %82 = vector.broadcast %cst_38 : f32 to vector<16x1xf32>
    %83 = arith.mulf %81, %82 : vector<16x1xf32>
    %84 = arith.mulf %80, %80 : vector<16x1xf32>
    %85 = arith.subf %83, %84 : vector<16x1xf32>
    %cst_39 = arith.constant 9.99999974E-6 : f32
    %86 = vector.broadcast %cst_39 : f32 to vector<16x1xf32>
    %87 = arith.addf %85, %86 : vector<16x1xf32>
    %88 = math.rsqrt %87 : vector<16x1xf32>
    %89 = arith.mulf %88, %9 : vector<16x1xf32>
    %90 = arith.mulf %80, %89 : vector<16x1xf32>
    %91 = arith.subf %10, %90 : vector<16x1xf32>
    %92 = vector.broadcast %89 : vector<16x1xf32> to vector<16x16xf32>
    %93 = arith.mulf %72, %92 : vector<16x16xf32>
    %94 = vector.broadcast %91 : vector<16x1xf32> to vector<16x16xf32>
    %95 = arith.addf %93, %94 : vector<16x16xf32>
    %cst_40 = arith.constant 2.000000e+01 : f32
    %96 = vector.broadcast %cst_40 : f32 to vector<16x16xf32>
    %97 = arith.minimumf %95, %96 : vector<16x16xf32>
    %98 = math.exp %97 : vector<16x16xf32>
    %cst_41 = arith.constant 1.000000e+00 : f32
    %99 = vector.broadcast %cst_41 : f32 to vector<16x16xf32>
    %100 = arith.addf %99, %98 : vector<16x16xf32>
    %101 = arith.mulf %100, %100 : vector<16x16xf32>
    %cst_42 = arith.constant 1.000000e+00 : f32
    %102 = vector.broadcast %cst_42 : f32 to vector<16x16xf32>
    %103 = arith.subf %101, %102 : vector<16x16xf32>
    %104 = arith.mulf %95, %103 : vector<16x16xf32>
    %cst_43 = arith.constant 1.000000e+00 : f32
    %105 = vector.broadcast %cst_43 : f32 to vector<16x16xf32>
    %106 = arith.addf %101, %105 : vector<16x16xf32>
    %107 = arith.divf %104, %106 : vector<16x16xf32>
    %c0_44 = arith.constant 0 : index
    %c0_45 = arith.constant 0 : index
    %108 = vector.load %arg5[%c0_44, %c0_45] : memref<16x8xf32, #tpu.memory_space<vmem>>, vector<16x8xf32>
    %cst_46 = arith.constant dense<0.000000e+00> : vector<16x16xf32>
    %109 = tpu.matmul %108, %1, %cst_46 {dimension_numbers = #tpu.dot_dimension_numbers<[1], [0], [0], [1], [0, 0, 1, 1], [], []>} : vector<16x8xf32>, vector<8x16xf32>, vector<16x16xf32> -> vector<16x16xf32>
    %110 = vector.broadcast %11 : vector<16x1xf32> to vector<16x16xf32>
    %111 = arith.addf %109, %110 : vector<16x16xf32>
    %112 = arith.addf %107, %111 : vector<16x16xf32>
    %c0_47 = arith.constant 0 : index
    %c0_48 = arith.constant 0 : index
    %c0_49 = arith.constant 0 : index
    %113 = vector.load %arg8[%c0_47, %c0_48, %c0_49] : memref<1x16x16xf32, #tpu.memory_space<vmem>>, vector<1x16x16xf32>
    %114 = vector.shape_cast %113 : vector<1x16x16xf32> to vector<16x16xf32>
    %115 = vector.shape_cast %112 : vector<16x16xf32> to vector<1x16x16xf32>
    tpu.vector_store %arg8[%c0_47, %c0_48, %c0_49], %115 {strides = array<i32>} : memref<1x16x16xf32, #tpu.memory_space<vmem>>, vector<1x16x16xf32>,
    return
  }
  func.func @transform_0(%arg0: i32) -> (i32, i32, i32) {
    %c0_i32 = arith.constant 0 : i32
    %c0_i32_0 = arith.constant 0 : i32
    %c0_i32_1 = arith.constant 0 : i32
    return %arg0, %c0_i32, %c0_i32_0 : i32, i32, i32
  }
  func.func @transform_1(%arg0: i32) -> (i32, i32, i32) {
    %c0_i32 = arith.constant 0 : i32
    %c0_i32_0 = arith.constant 0 : i32
    %c0_i32_1 = arith.constant 0 : i32
    return %arg0, %c0_i32, %c0_i32_0 : i32, i32, i32
  }
  func.func @transform_2(%arg0: i32) -> (i32, i32) {
    %c0_i32 = arith.constant 0 : i32
    %c0_i32_0 = arith.constant 0 : i32
    %c0_i32_1 = arith.constant 0 : i32
    return %c0_i32, %c0_i32_0 : i32, i32
  }
  func.func @transform_3(%arg0: i32) -> (i32, i32) {
    %c0_i32 = arith.constant 0 : i32
    %c0_i32_0 = arith.constant 0 : i32
    %c0_i32_1 = arith.constant 0 : i32
    return %c0_i32, %c0_i32_0 : i32, i32
  }
  func.func @transform_4(%arg0: i32) -> (i32, i32) {
    %c0_i32 = arith.constant 0 : i32
    %c0_i32_0 = arith.constant 0 : i32
    %c0_i32_1 = arith.constant 0 : i32
    return %c0_i32, %c0_i32_0 : i32, i32
  }
  func.func @transform_5(%arg0: i32) -> (i32, i32) {
    %c0_i32 = arith.constant 0 : i32
    %c0_i32_0 = arith.constant 0 : i32
    %c0_i32_1 = arith.constant 0 : i32
    return %c0_i32, %c0_i32_0 : i32, i32
  }
  func.func @transform_6(%arg0: i32) -> (i32, i32) {
    %c0_i32 = arith.constant 0 : i32
    %c0_i32_0 = arith.constant 0 : i32
    %c0_i32_1 = arith.constant 0 : i32
    return %c0_i32, %c0_i32_0 : i32, i32
  }
  func.func @transform_7(%arg0: i32) -> (i32, i32, i32) {
    %c0_i32 = arith.constant 0 : i32
    %c0_i32_0 = arith.constant 0 : i32
    %c0_i32_1 = arith.constant 0 : i32
    return %arg0, %c0_i32, %c0_i32_0 : i32, i32, i32
  }
}

</mosaic_0001>

<bundles_post_ra>
// kernel: tpu_custom_call.1
= control target key start
LH: loop header
LB: loop body
LE: loop exit
PB: predicated region body
PF: predicated region fallthrough
CT: control target
= control target key end

     0   :  { %12 = vsyncpa [#allocation3], 0  ;;  %s1907_s0 = inlined_call_operand.vmem [shape: f32[2,8,16], index: 0, kind: input, shape index: {}]   ;;  %s1908_s1 = inlined_call_operand.vmem [shape: f32[2,16,1], index: 1, kind: input, shape index: {}]   ;;  %s1909_s2 = inlined_call_operand.vmem [shape: f32[16,40], index: 2, kind: input, shape index: {}]   ;;  %s1910_s3 = inlined_call_operand.vmem [shape: f32[16,80], index: 3, kind: input, shape index: {}]   ;;  %s1911_s4 = inlined_call_operand.vmem [shape: f32[16,8], index: 4, kind: input, shape index: {}]   ;;  %s1912_s5 = inlined_call_operand.vmem [shape: f32[16,7], index: 5, kind: input, shape index: {}]   ;;  %s1913_s6 = inlined_call_operand.vmem [shape: f32[16,16], index: 6, kind: input, shape index: {}]   ;;  %s1914_s7 = inlined_call_operand.hbm [shape: f32[2,16,16], index: 7, kind: output, shape index: {}]  }
   0x1   :  { %14 = vsyncpa [#allocation3 + $0x1], 0  ;;  %s1655_s24 = smov 0   ;;  %s1657_s25 = smov 0  }
   0x2   :  { %s1659_s26 = smov 0   ;;  %s1661_s27 = smov 0  }
   0x3 LB: > { %s1676_s28 = sadd.s32 4294967295, %s1598_s27   ;;  %s1229_s29 = sadd.s32 4294967294, %s1598_s27   ;;  %s1598_s27 = sphi %s1661_s27, %s1920_s27   ;;  %s1594_s26 = sphi %s1659_s26, %s1919_s26   ;;  %s1590_s25 = sphi %s1657_s25, %s1918_s25   ;;  %s1586_s24 = sphi %s1655_s24, %s1917_s24  }
   0x4   : > { %s1680_s30 = sadd.s32 1, %s1598_s27   ;;  %s184_s8 = sadd.s32 1, %s1594_s26 }
   0x5   : > { %s181_s9 = ssub.s32 %s1598_s27, %s1680_s30  ;;  %p194_p0 = scmp.ne.s32.totalorder %s1594_s26, %s1590_s25 }
   0x6   : > { %p182_p1 = scmp.eq.s32.totalorder %s181_s9, 0  ;;  %p195_p2 = scmp.eq.s32.totalorder %s1676_s28, 1 }
   0x7   : > { %p200_p3 = scmp.ne.s32.totalorder %s1590_s25, %s1586_s24  ;;  %p201_p4 = scmp.eq.s32.totalorder %s1229_s29, 1 }
   0x8   : > { %s1691_s10 = scalar_select %p182_p1, %s1594_s26, %s184_s8  }
   0x9   : > { %p1693_p5 = por %p195_p2, %p194_p0  ;;  %p1697_p6 = por %p201_p4, %p200_p3 }
   0xa   : > { %p1232_p7 = scmp.ge.s32.totalorder %s1598_s27, 1  ;;  %p249_p8 = scmp.lt.s32.totalorder %s1598_s27, 3 }
   0xc   : > { %p250_p9 = pnand %p1232_p7, %p249_p8 }
   0xd   : > { %p285_p10 = scmp.lt.s32.totalorder (!%p250_p9), %s1676_s28, 1  ;;  %s1600_s18 = smov (!%p250_p9), 2   ;;  %vm307_vm0 = vcmask (!%p250_p9), 15360   ;;  %vm309_vm1 = vcmask (!%p250_p9), 146432   ;;  %v301_v2 = vld [vmem:[%s1909_s2] sm:$0xff] (!%p250_p9)  ;;  %vm334_vm2 = vcmask (!%p250_p9), 326656  }
   0xe   : > { %253 = sbr.rel (%p250_p9) target bundleno = 2322 (0x912), region = 48  ;;  %1313 = vmatprep.mubr.msk.f32.mxu0 (!%p250_p9), %vm334_vm2, %v301_v2  ;;  %s1601_s21 = smov (!%p250_p9), 126   ;;  %v1603_v5 = vmov (!%p250_p9), 0   ;;  %v1730_v6 = vld [vmem:[%s1912_s5 + $0x8] sm:$0xff] (!%p250_p9)  ;;  %v1735_v7 = vld [vmem:[%s1912_s5] sm:$0xff] (!%p250_p9)  ;;  %vm1606_vm3 = vmmov (!%p250_p9), 1   ;;  %vm1391_vm6 = vmpackc.low (!%p250_p9), %vm309_vm1, %vm309_vm1 }
   0xf   : > { %s1602_s22 = smov (!%p250_p9), 127   ;;  %1474 = vset.pattern.permute.xlu0 (!%p250_p9), %v1603_v5  ;;  %1473 = vset.pattern.permute.xlu1 (!%p250_p9), %v1603_v5  ;;  %s1604_s23 = smov (!%p250_p9), 125   ;;  %vm1373_vm4 = vmpackc.low (!%p250_p9), %vm1606_vm3, %vm309_vm1  ;;  %v302_v14 = vld [vmem:[%s1909_s2 + $0x8] sm:$0xff] (!%p250_p9)  ;;  %vm416_vm5 = vcmask (!%p250_p9), 130048   ;;  %v1761_v27 = vld [vmem:[%s1913_s6] sm:$0xff] (!%p250_p9)  ;;  %v1607_v57 = vmov (!%p250_p9), 2  }
  0x10   : > { %s1605_s29 = smov (!%p250_p9), 124   ;;  %1327 = vmatprep.mubr.msk.f32.mxu1 (!%p250_p9), %vm416_vm5, %v1761_v27  ;;  %v1774_v33 = vld [vmem:[%s1913_s6 + $0x8] sm:$0xff] (!%p250_p9)  ;;  %vm723_vm7 = vcmask (!%p250_p9), 654336   ;;  %vm1055_vm8 = vcmask (!%p250_p9), 64512   ;;  %s1609_s8 = smov (!%p250_p9), 5  }
  0x11   : > { %s282_s9 = sand.u32 (!%p250_p9), 1, %s1590_s25  }
  0x15   : > { %s1705_s13 = scalar_select %p285_p10, %s1676_s28, 1 }
  0x17   : > { %s1234_s14 = sshll.u32 %s1705_s13, 3 }
  0x18   : > { %s288_s17 = scalar_lea.vmem %s1907_s0, %s1234_s14  ;;  %s1263_s14 = sshll.u32 %s1705_s13, 4 }
  0x19   : > { %v1711_v0 = vld [vmem:[%s288_s17] sm:$0xff]  ;;  %s293_s17 = scalar_lea.vmem %s1908_s1, %s1263_s14  ;;  %s1233_s14 = sshll.u32 %s282_s9, 4 }
  0x1a   : > { %304 = vrot.lane.b32.xlu0 %v1711_v0, %s1600_s18  ;;  %v298_v62 = vld [vmem:[%s293_s17 + $0x8] sm:$0xff]  ;;  %v297_v63 = vld [vmem:[%s293_s17] sm:$0xff]  ;;  %s284_s15 = scalar_lea.vmem [#allocation2], %s1233_s14  ;;  %s1264_s17 = sshll.u32 %s1676_s28, 8 }
  0x1b   : > { %s1155_s16 = sshll.u32 %s284_s15, 4  ;;  %s1863_s16 = int_to_ptr.vmem [resolvable:$true] %s1155_s16 }
  0x1c   : > { %s1536_s28 = scalar_lea.vmem %s1863_s16, 256 }
  0x1d   : > { %p1537_p11 = scmp.ne.s32.totalorder %s1863_s16, %s1536_s28 }
  0x1f   : > { %p1538_p12 = pnand %p1537_p11, %p1693_p5 }
  0x21   : > { %p1539_p13 = pneg %p1538_p12 }
  0x8c   : > { %v305_v1 = vpop.permute.xlu0 %304 }
  0x8d   : > { %v308_v3 = vsel %vm307_vm0, 0.0, %v305_v1 }
  0x8e   : > { %v310_v4 = vsel %vm309_vm1, %v308_v3, 0.0 }
  0x8f   : > { %315 = vrot.lane.b32.xlu1 %v310_v4, %s1601_s21  ;;  %312 = vrot.lane.b32.xlu0 %v310_v4, %s1602_s22 }
  0x93   : > { %318 = vrot.lane.b32.xlu1 %v310_v4, %s1604_s23  ;;  %321 = vrot.lane.b32.xlu0 %v310_v4, %s1605_s29 }
  0x97   : > { %331 = vperm.xlu0 %1474, %v1730_v6   ;;  %326 = vperm.xlu1 %1473, %v1735_v7  }
 0x101   : > { %v316_v8 = vpop.permute.xlu1 %315  ;;  %v313_v9 = vpop.permute.xlu0 %312 }
 0x102   : > { %v1372_v10 = vpack.c.bf16 %v313_v9, %v308_v3 }
 0x104   : > { %1374 = vmatprep.subr.msk.bf16.mxu0 %vm1373_vm4, %v1372_v10 }
 0x105   : > { %v319_v11 = vpop.permute.xlu1 %318  ;;  %1377 = vmatpush3.bf16.msk.msra.mxu0 %vm1373_vm4, %v1372_v10  ;;  %v322_v13 = vpop.permute.xlu0 %321 }
 0x106   : > { %v1378_v12 = vpack.c.bf16 %v319_v11, %v316_v8 }
 0x108   : > { %1379 = vmatprep.subr.bf16.mxu0 %v1378_v12 }
 0x109   : > { %1381 = vmatpush3.bf16.msra.mxu0 %v1378_v12 }
 0x10a   : > { %1311 = vmatprep.subr.mxu0 %v322_v13 }
 0x10d   : > { %1312 = vmatpush3.msra.mxu0 %v322_v13 }
 0x10e   : > { %1314 = vmatmul.mubr.msk.f32.vlgmr.msra.gmra.mrb[0].mxu0 %vm334_vm2, %v302_v14 }
 0x10f   : > { %1320 = vmatprep.mubr.msk.f32.mxu0 %vm416_vm5, %v1761_v27 }
 0x116   : > { %v332_v15 = vpop.permute.xlu0 %331  ;;  %v327_v16 = vpop.permute.xlu1 %326 }
 0x1e1   : > { %v1315_v17 = vpop.f32.mrb[0].mxu0 }
 0x1e2   : > { %v1744_v18 = vadd.f32 %v1315_v17, %v332_v15  ;;  %v407_v19 = vpop.f32.mrb[1].mxu0 }
 0x1e3   : > { %v1746_v20 = vadd.f32 %v407_v19, %v327_v16 }
 0x1e4   : > { %v420_v21 = vsel %vm416_vm5, %v1744_v18, 0.0  ;;  %v424_v22 = vmul.f32 %v1744_v18, %v1744_v18 }
 0x1e5   : > { %421 = vadd.xlane.f32.xlu0 %v420_v21  ;;  %v417_v23 = vsel %vm416_vm5, %v1746_v20, 0.0  ;;  %v423_v24 = vmul.f32 %v1746_v20, %v1746_v20 }
 0x1e6   : > { %418 = vadd.xlane.f32.xlu1 %v417_v23  ;;  %v428_v25 = vsel %vm416_vm5, %v424_v22, 0.0 }
 0x1e7   : > { %v425_v26 = vsel %vm416_vm5, %v423_v24, 0.0 }
 0x1e9   : > { %429 = vadd.xlane.f32.xlu0 %v428_v25 }
 0x1ea   : > { %426 = vadd.xlane.f32.xlu1 %v425_v26 }
 0x1fb   : > { %599 = vrot.lane.b32.xlu1 %v1735_v7, %s1602_s22 }
 0x1ff   : > { %601 = vrot.lane.b32.xlu0 %v1730_v6, %s1602_s22 }
 0x272   : > { %v422_v28 = vpop.xlane.xlu0 %421 }
 0x273   : > { %v419_v29 = vpop.xlane.xlu1 %418 }
 0x274   : > { %v1382_v30 = vpack.c.bf16 %v422_v28, %v419_v29 }
 0x276   : > { %1383 = vmatprep.subr.bf16.mxu0 %v1382_v30  ;;  %v430_v31 = vpop.xlane.xlu0 %429 }
 0x277   : > { %v427_v32 = vpop.xlane.xlu1 %426  ;;  %1385 = vmatpush3.bf16.msra.mxu0 %v1382_v30 }
 0x278   : > { %v1386_v34 = vpack.c.bf16 %v430_v31, %v427_v32 }
 0x27a   : > { %1387 = vmatprep.subr.bf16.mxu1 %v1386_v34  ;;  %1321 = vmatmul.mubr.msk.f32.vlgmr.msra.gmra.mrb[2].mxu0 %vm416_vm5, %v1774_v33  ;;  %v602_v49 = vpop.permute.xlu0 %601 }
 0x27b   : > { %1389 = vmatpush3.bf16.msra.mxu1 %v1386_v34  ;;  %1357 = vmatprep.mubr.msk.f32.mxu0 %vm416_vm5, %v1761_v27  ;;  %v600_v50 = vpop.permute.xlu1 %599 }
 0x27e   : > { %1328 = vmatmul.mubr.msk.f32.vlgmr.msra.gmra.mrb[0].mxu1 %vm416_vm5, %v1774_v33 }
 0x34d   : > { %v1322_v35 = vpop.f32.mrb[2].mxu0 }
 0x34e   : > { %v513_v36 = vmul.f32 0.03125, %v1322_v35  ;;  %v503_v37 = vpop.f32.mrb[3].mxu0 }
 0x34f   : > { %v512_v38 = vmul.f32 0.03125, %v503_v37 }
 0x350   : > { %v592_v39 = vmul.f32 %v513_v36, %v513_v36 }
 0x351   : > { %v591_v40 = vmul.f32 %v512_v38, %v512_v38  ;;  %v1329_v41 = vpop.f32.mrb[0].mxu1 }
 0x352   : > { %v590_v42 = vmul.f32 0.03125, %v1329_v41  ;;  %v580_v43 = vpop.f32.mrb[1].mxu1 }
 0x353   : > { %v589_v44 = vmul.f32 0.03125, %v580_v43 }
 0x354   : > { %v594_v45 = vsub.f32 %v590_v42, %v592_v39 }
 0x355   : > { %v593_v46 = vsub.f32 %v589_v44, %v591_v40 }
 0x356   : > { %v596_v47 = vadd.f32 1e-05, %v594_v45 }
 0x357   : > { %v595_v48 = vadd.f32 1e-05, %v593_v46 }
 0x358   : > { %1512 = vrsqrt.f32 %v596_v47 }
 0x359   : > { %1514 = vrsqrt.f32 %v595_v48  ;;  %v675_v48 = vld [vmem:[%s1910_s3] sm:$0xff] }
 0x35a   : > { %1350 = vmatprep.mubr.msk.f32.mxu1 %vm723_vm7, %v675_v48 }
 0x362   : > { %v1513_v51 = vpop.eup %1512 }
 0x363   : > { %v1515_v52 = vpop.eup %1514  ;;  %v606_v53 = vmul.f32 %v1513_v51, %v602_v49  ;;  %v1608_v49 = vmov 3  }
 0x364   : > { %v605_v54 = vmul.f32 %v1515_v52, %v600_v50 }
 0x365   : > { %v608_v55 = vmul.f32 %v606_v53, %v513_v36 }
 0x366   : > { %v607_v56 = vmul.f32 %v605_v54, %v512_v38  ;;  %621 = vperm.xlu0 %1474, %v605_v54  }
 0x368   : > { %611 = vrot.lane.b32.xlu1 %v607_v56, %s1600_s18 }
 0x36a   : > { %1475 = vset.pattern.permute.xlu0 %v1607_v57 }
 0x36c   : > { %613 = vrot.lane.b32.xlu1 %v608_v55, %s1600_s18 }
 0x370   : > { %626 = vperm.xlu1 %1473, %v606_v53  }
 0x374   : > { %1476 = vset.pattern.permute.xlu1 %v1607_v57 }
 0x3da   : > { %v612_v58 = vpop.permute.xlu1 %611 }
 0x3db   : > { %v617_v59 = vsub.f32 %v1735_v7, %v612_v58 }
 0x3dd   : > { %633 = vperm.xlu0 %1475, %v617_v59  }
 0x3de   : > { %v614_v60 = vpop.permute.xlu1 %613 }
 0x3df   : > { %v618_v61 = vsub.f32 %v1730_v6, %v614_v60 }
 0x3e1   : > { %638 = vperm.xlu1 %1476, %v618_v61   ;;  %1478 = vset.pattern.permute.xlu0 %v1603_v5 }
 0x3e2   : > { %670 = vperm.xlu0 %1478, %v298_v62  }
 0x3e5   : > { %1477 = vset.pattern.permute.xlu1 %v1603_v5  ;;  %v622_v1 = vpop.permute.xlu0 %621 }
 0x3e6   : > { %665 = vperm.xlu1 %1477, %v297_v63   ;;  %v629_v2 = vmul.f32 %v622_v1, %v1746_v20  ;;  %1505 = vset.pattern.permute.xlu0 %v1608_v49 }
 0x3ea   : > { %1504 = vset.pattern.permute.xlu1 %v1608_v49 }
 0x3ef   : > { %v627_v3 = vpop.permute.xlu1 %626 }
 0x3f0   : > { %v630_v9 = vmul.f32 %v627_v3, %v1744_v18 }
 0x45c   : > { %v634_v4 = vpop.permute.xlu0 %633 }
 0x45d   : > { %v641_v8 = vadd.f32 %v634_v4, %v629_v2  ;;  %v676_v2 = vld [vmem:[%s1910_s3 + $0x8] sm:$0xff] }
 0x45f   : > { %v643_v10 = vmin.f32 %v641_v8, 20.0 }
 0x460   : > { %v639_v11 = vpop.permute.xlu1 %638 }
 0x461   : > { %v645_v12 = vmul.f32 1.442695, %v643_v10  ;;  %v642_v13 = vadd.f32 %v639_v11, %v630_v9  ;;  %v671_v34 = vpop.permute.xlu0 %670 }
 0x463   : > { %1516 = vpow2.f32 %v645_v12  ;;  %v644_v14 = vmin.f32 %v642_v13, 20.0 }
 0x465   : > { %v647_v15 = vmul.f32 1.442695, %v644_v14  ;;  %v666_v32 = vpop.permute.xlu1 %665 }
 0x467   : > { %1518 = vpow2.f32 %v647_v15 }
 0x46d   : > { %v1517_v16 = vpop.eup %1516 }
 0x46e   : > { %v649_v17 = vadd.f32 1.0, %v1517_v16 }
 0x470   : > { %v651_v19 = vmul.f32 %v649_v17, %v649_v17 }
 0x471   : > { %v1519_v21 = vpop.eup %1518 }
 0x472   : > { %v657_v22 = vadd.f32 1.0, %v651_v19  ;;  %v650_v23 = vadd.f32 1.0, %v1519_v21  ;;  %v1244_v25 = vadd.f32 -1.0, %v651_v19 }
 0x474   : > { %1520 = vrcp.f32 %v657_v22  ;;  %v652_v20 = vmul.f32 %v650_v23, %v650_v23  ;;  %v655_v28 = vmul.f32 %v1244_v25, %v641_v8  ;;  %v1045_v25 = vld [vmem:[%s1911_s4] sm:$0xff] }
 0x476   : > { %v658_v24 = vadd.f32 1.0, %v652_v20  ;;  %v1245_v18 = vadd.f32 -1.0, %v652_v20 }
 0x478   : > { %1522 = vrcp.f32 %v658_v24  ;;  %v656_v29 = vmul.f32 %v1245_v18, %v642_v13  ;;  %v1046_v18 = vld [vmem:[%s1911_s4 + $0x8] sm:$0xff] }
 0x47e   : > { %v1521_v26 = vpop.eup %1520 }
 0x47f   : > { %v660_v30 = vmul.f32 %v1521_v26, %v655_v28 }
 0x481   : > { %v673_v36 = vadd.f32 %v666_v32, %v660_v30 }
 0x482   : > { %v1523_v31 = vpop.eup %1522 }
 0x483   : > { %v662_v35 = vmul.f32 %v1523_v31, %v656_v29 }
 0x485   : > { %v674_v37 = vadd.f32 %v671_v34, %v662_v35 }
 0x487   : > { %v1479_v38 = vpack.i.bf16 %v674_v37, %v673_v36 }
 0x489   : > { %1480 = vrot.lane.b32.xlu1 %v1479_v38, %s1600_s18 }
 0x4fb   : > { %v1481_v39 = vpop.permute.xlu1 %1480 }
 0x4fc   : > { %v1483_v40 = vunpack.i.h.bf16 %v1481_v39  ;;  %v1482_v41 = vunpack.i.l.bf16 %v1481_v39 }
 0x4fe   : > { %v686_v42 = vsel %vm307_vm0, 0.0, %v1483_v40  ;;  %v685_v43 = vsel %vm307_vm0, 0.0, %v1482_v41 }
 0x4ff   : > { %v688_v44 = vsel %vm309_vm1, %v686_v42, 0.0  ;;  %v687_v45 = vsel %vm309_vm1, %v685_v43, 0.0  ;;  %v1390_v46 = vpack.c.bf16 %v686_v42, %v685_v43 }
 0x500   : > { %v1489_v47 = vpack.i.bf16 %v688_v44, %v687_v45 }
 0x501   : > { %1392 = vmatprep.subr.msk.bf16.mxu1 %vm1391_vm6, %v1390_v46 }
 0x502   : > { %1395 = vmatpush3.bf16.msk.msra.mxu1 %vm1391_vm6, %v1390_v46  ;;  %1490 = vrot.lane.b32.xlu0 %v1489_v47, %s1601_s21  ;;  %s1861_s21 = scalar_lea.hbm %s1914_s7, %s1264_s17 }
 0x503   : > { %1485 = vrot.lane.b32.xlu1 %v1489_v47, %s1602_s22  ;;  %s1866_s22 = scalar_lea.sflag [#allocation3], %s282_s9 }
 0x506   : > { %1500 = vrot.lane.b32.xlu0 %v1489_v47, %s1605_s29 }
 0x507   : > { %1495 = vrot.lane.b32.xlu1 %v1489_v47, %s1604_s23  ;;  %v1610_v47 = vmov 5   ;;  %s1612_s23 = smov [#allocation2]  }
 0x50a   : > { %720 = vperm.xlu0 %1505, %v1730_v6  }
 0x50b   : > { %716 = vperm.xlu1 %1504, %v1735_v7  }
 0x50e   : > { %1506 = vset.pattern.permute.xlu0 %v1603_v5 }
 0x50f   : > { %1507 = vset.pattern.permute.xlu1 %v1603_v5 }
 0x574   : > { %v1491_v50 = vpop.permute.xlu0 %1490 }
 0x575   : > { %v1486_v51 = vpop.permute.xlu1 %1485  ;;  %v1493_v52 = vunpack.i.h.bf16 %v1491_v50  ;;  %v1492_v53 = vunpack.i.l.bf16 %v1491_v50 }
 0x576   : > { %v1488_v54 = vunpack.i.h.bf16 %v1486_v51  ;;  %v1487_v55 = vunpack.i.l.bf16 %v1486_v51 }
 0x577   : > { %v1400_v58 = vpack.c.bf16 %v1493_v52, %v1492_v53  ;;  %v1611_v52 = vmov 6  }
 0x578   : > { %v1396_v56 = vpack.c.bf16 %v1488_v54, %v1487_v55  ;;  %v1501_v61 = vpop.permute.xlu0 %1500 }
 0x579   : > { %v1496_v57 = vpop.permute.xlu1 %1495  ;;  %v1503_v62 = vunpack.i.h.bf16 %v1501_v61  ;;  %v1502_v63 = vunpack.i.l.bf16 %v1501_v61 }
 0x57a   : > { %v1498_v59 = vunpack.i.h.bf16 %v1496_v57  ;;  %v1497_v60 = vunpack.i.l.bf16 %v1496_v57  ;;  %1397 = vmatprep.subr.bf16.mxu1 %v1396_v56 }
 0x57b   : > { %1399 = vmatpush3.bf16.msra.mxu1 %v1396_v56  ;;  %v1408_v5 = vpack.c.bf16 %v1503_v62, %v1502_v63 }
 0x57c   : > { %1401 = vmatprep.subr.bf16.mxu1 %v1400_v58  ;;  %v1404_v1 = vpack.c.bf16 %v1498_v59, %v1497_v60 }
 0x57f   : > { %1403 = vmatpush3.bf16.msra.mxu1 %v1400_v58 }
 0x580   : > { %1405 = vmatprep.subr.bf16.mxu1 %v1404_v1 }
 0x583   : > { %1407 = vmatpush3.bf16.msra.mxu1 %v1404_v1 }
 0x584   : > { %1409 = vmatprep.subr.bf16.mxu1 %v1408_v5 }
 0x587   : > { %1411 = vmatpush3.bf16.msra.mxu1 %v1408_v5 }
 0x589   : > { %v721_v3 = vpop.permute.xlu0 %720 }
 0x58a   : > { %1351 = vmatmul.mubr.msk.f32.vlgmr.msra.gmra.mrb[2].mxu1 %vm723_vm7, %v676_v2  ;;  %v717_v4 = vpop.permute.xlu1 %716 }
 0x65d   : > { %v1352_v8 = vpop.f32.mrb[2].mxu1 }
 0x65e   : > { %v1817_v9 = vadd.f32 %v1352_v8, %v721_v3  ;;  %v796_v10 = vpop.f32.mrb[3].mxu1 }
 0x65f   : > { %v1819_v11 = vadd.f32 %v796_v10, %v717_v4 }
 0x660   : > { %v808_v12 = vsel %vm416_vm5, %v1817_v9, 0.0  ;;  %v812_v13 = vmul.f32 %v1817_v9, %v1817_v9 }
 0x661   : > { %809 = vadd.xlane.f32.xlu0 %v808_v12  ;;  %v805_v14 = vsel %vm416_vm5, %v1819_v11, 0.0  ;;  %v811_v15 = vmul.f32 %v1819_v11, %v1819_v11 }
 0x662   : > { %806 = vadd.xlane.f32.xlu1 %v805_v14  ;;  %v816_v16 = vsel %vm416_vm5, %v812_v13, 0.0 }
 0x663   : > { %v813_v17 = vsel %vm416_vm5, %v811_v15, 0.0 }
 0x665   : > { %817 = vadd.xlane.f32.xlu0 %v816_v16 }
 0x666   : > { %814 = vadd.xlane.f32.xlu1 %v813_v17 }
 0x677   : > { %981 = vrot.lane.b32.xlu1 %v1735_v7, %s1605_s29 }
 0x67b   : > { %983 = vrot.lane.b32.xlu0 %v1730_v6, %s1605_s29  ;;  %s1540_s29 = sshll.u32 %s1612_s23, 4  ;;  %s1541_s29 = int_to_ptr.vmem [resolvable:$false] %s1540_s29 }
 0x67c   : > { %s1542_s19 = scalar_lea.vmem %s1541_s29, 512  ;;  %p1543_p0 = scmp.lt.s32.totalorder %s1863_s16, %s1541_s29 }
 0x67d   : > { %p1544_p1 = scmp.lt.s32.totalorder %s1542_s19, %s1536_s28 }
 0x67f   : > { %p1545_p2 = por %p1544_p1, %p1543_p0 }
 0x681   : > { %p1546_p3 = pnand %p1545_p2, %p1539_p13 }
 0x6ee   : > { %v810_v19 = vpop.xlane.xlu0 %809 }
 0x6ef   : > { %v807_v21 = vpop.xlane.xlu1 %806 }
 0x6f0   : > { %v1412_v22 = vpack.c.bf16 %v810_v19, %v807_v21 }
 0x6f2   : > { %v818_v23 = vpop.xlane.xlu0 %817  ;;  %1413 = vmatprep.subr.bf16.mxu0 %v1412_v22 }
 0x6f3   : > { %1415 = vmatpush3.bf16.msra.mxu0 %v1412_v22  ;;  %v815_v20 = vpop.xlane.xlu1 %814 }
 0x6f4   : > { %v1416_v24 = vpack.c.bf16 %v818_v23, %v815_v20 }
 0x6f6   : > { %1358 = vmatmul.mubr.msk.f32.vlgmr.msra.gmra.mrb[4].mxu0 %vm416_vm5, %v1774_v33  ;;  %1417 = vmatprep.subr.bf16.mxu0 %v1416_v24  ;;  %v984_v39 = vpop.permute.xlu0 %983 }
 0x6f7   : > { %1419 = vmatpush3.bf16.msra.mxu0 %v1416_v24  ;;  %1364 = vmatprep.mubr.msk.f32.mxu0 %vm416_vm5, %v1761_v27  ;;  %v982_v40 = vpop.permute.xlu1 %981 }
 0x6f8   : > { %1367 = vmatprep.subr.mxu0 %v1711_v0 }
 0x6fa   : > { %1365 = vmatmul.mubr.msk.f32.vlgmr.msra.gmra.mrb[6].mxu0 %vm416_vm5, %v1774_v33 }
 0x6fb   : > { %1368 = vmatpush3.msra.mxu0 %v1711_v0  ;;  %1369 = vmatprep.mubr.msk.f32.mxu0 %vm1055_vm8, %v1045_v25 }
 0x6fe   : > { %1370 = vmatmul.mubr.msk.f32.vlgmr.msra.gmra.mrb[8].mxu0 %vm1055_vm8, %v1046_v18 }
 0x7c9   : > { %v1359_v26 = vpop.f32.mrb[4].mxu0 }
 0x7ca   : > { %v895_v27 = vmul.f32 0.03125, %v1359_v26  ;;  %v885_v28 = vpop.f32.mrb[5].mxu0 }
 0x7cb   : > { %v894_v29 = vmul.f32 0.03125, %v885_v28 }
 0x7cc   : > { %v974_v31 = vmul.f32 %v895_v27, %v895_v27 }
 0x7cd   : > { %v1366_v30 = vpop.f32.mrb[6].mxu0  ;;  %v973_v0 = vmul.f32 %v894_v29, %v894_v29 }
 0x7ce   : > { %v972_v33 = vmul.f32 0.03125, %v1366_v30  ;;  %v962_v32 = vpop.f32.mrb[7].mxu0 }
 0x7cf   : > { %v971_v34 = vmul.f32 0.03125, %v962_v32 }
 0x7d0   : > { %v976_v35 = vsub.f32 %v972_v33, %v974_v31 }
 0x7d1   : > { %v975_v36 = vsub.f32 %v971_v34, %v973_v0  ;;  %v1371_v53 = vpop.f32.mrb[8].mxu0 }
 0x7d2   : > { %v978_v37 = vadd.f32 1e-05, %v976_v35  ;;  %v1128_v54 = vpop.f32.mrb[9].mxu0 }
 0x7d3   : > { %v977_v38 = vadd.f32 1e-05, %v975_v36 }
 0x7d4   : > { %1524 = vrsqrt.f32 %v978_v37 }
 0x7d5   : > { %1526 = vrsqrt.f32 %v977_v38 }
 0x7de   : > { %v1525_v41 = vpop.eup %1524 }
 0x7df   : > { %v1527_v42 = vpop.eup %1526  ;;  %v988_v43 = vmul.f32 %v1525_v41, %v984_v39 }
 0x7e0   : > { %v987_v44 = vmul.f32 %v1527_v42, %v982_v40 }
 0x7e1   : > { %v990_v45 = vmul.f32 %v988_v43, %v895_v27 }
 0x7e2   : > { %v989_v46 = vmul.f32 %v987_v44, %v894_v29  ;;  %1003 = vperm.xlu0 %1506, %v987_v44  }
 0x7e4   : > { %993 = vrot.lane.b32.xlu1 %v989_v46, %s1609_s8 }
 0x7e6   : > { %1509 = vset.pattern.permute.xlu0 %v1610_v47 }
 0x7e8   : > { %995 = vrot.lane.b32.xlu1 %v990_v45, %s1609_s8 }
 0x7ec   : > { %1008 = vperm.xlu1 %1507, %v988_v43  }
 0x7f0   : > { %1508 = vset.pattern.permute.xlu1 %v1610_v47 }
 0x856   : > { %v994_v48 = vpop.permute.xlu1 %993 }
 0x857   : > { %v999_v49 = vsub.f32 %v1735_v7, %v994_v48 }
 0x859   : > { %1015 = vperm.xlu1 %1508, %v999_v49  }
 0x85a   : > { %v996_v50 = vpop.permute.xlu1 %995 }
 0x85b   : > { %v1000_v51 = vsub.f32 %v1730_v6, %v996_v50 }
 0x85d   : > { %1020 = vperm.xlu0 %1509, %v1000_v51   ;;  %1510 = vset.pattern.permute.xlu1 %v1611_v52 }
 0x85e   : > { %1048 = vperm.xlu1 %1510, %v1735_v7  }
 0x861   : > { %1511 = vset.pattern.permute.xlu0 %v1611_v52  ;;  %v1004_v55 = vpop.permute.xlu0 %1003 }
 0x862   : > { %1052 = vperm.xlu1 %1510, %v1730_v6   ;;  %v1011_v57 = vmul.f32 %v1004_v55, %v1819_v11 }
 0x86b   : > { %v1009_v56 = vpop.permute.xlu1 %1008 }
 0x86c   : > { %v1012_v60 = vmul.f32 %v1009_v56, %v1817_v9 }
 0x8d8   : > { %v1016_v58 = vpop.permute.xlu1 %1015 }
 0x8d9   : > { %v1023_v59 = vadd.f32 %v1016_v58, %v1011_v57 }
 0x8db   : > { %v1025_v61 = vmin.f32 %v1023_v59, 20.0 }
 0x8dc   : > { %v1021_v62 = vpop.permute.xlu0 %1020 }
 0x8dd   : > { %v1027_v63 = vmul.f32 1.442695, %v1025_v61  ;;  %v1024_v1 = vadd.f32 %v1021_v62, %v1012_v60  ;;  %v1049_v13 = vpop.permute.xlu1 %1048 }
 0x8de   : > { %v1129_v16 = vadd.f32 %v1128_v54, %v1049_v13 }
 0x8df   : > { %1528 = vpow2.f32 %v1027_v63  ;;  %v1026_v7 = vmin.f32 %v1024_v1, 20.0 }
 0x8e1   : > { %v1029_v5 = vmul.f32 1.442695, %v1026_v7  ;;  %v1053_v21 = vpop.permute.xlu1 %1052 }
 0x8e2   : > { %v1134_v25 = vadd.f32 %v1371_v53, %v1053_v21 }
 0x8e3   : > { %1530 = vpow2.f32 %v1029_v5 }
 0x8e9   : > { %v1529_v6 = vpop.eup %1528 }
 0x8ea   : > { %v1031_v2 = vadd.f32 1.0, %v1529_v6 }
 0x8ec   : > { %v1033_v3 = vmul.f32 %v1031_v2, %v1031_v2 }
 0x8ed   : > { %v1531_v4 = vpop.eup %1530 }
 0x8ee   : > { %v1039_v8 = vadd.f32 1.0, %v1033_v3  ;;  %v1032_v10 = vadd.f32 1.0, %v1531_v4  ;;  %v1254_v9 = vadd.f32 -1.0, %v1033_v3 }
 0x8f0   : > { %1532 = vrcp.f32 %v1039_v8  ;;  %v1034_v11 = vmul.f32 %v1032_v10, %v1032_v10  ;;  %v1037_v14 = vmul.f32 %v1254_v9, %v1023_v59 }
 0x8f2   : > { %v1040_v12 = vadd.f32 1.0, %v1034_v11  ;;  %v1255_v15 = vadd.f32 -1.0, %v1034_v11 }
 0x8f4   : > { %1534 = vrcp.f32 %v1040_v12  ;;  %v1038_v22 = vmul.f32 %v1255_v15, %v1024_v1 }
 0x8fa   : > { %v1533_v17 = vpop.eup %1532 }
 0x8fb   : > { %v1042_v19 = vmul.f32 %v1533_v17, %v1037_v14 }
 0x8fd   : > { %v1137_v23 = vadd.f32 %v1129_v16, %v1042_v19 }
 0x8fe   : > { %v1535_v20 = vpop.eup %1534 }
 0x8ff   : > { %1139 = vst.msk [vmem:[%s284_s15] sm:$0xff] %vm416_vm5, %v1137_v23  ;;  %v1044_v24 = vmul.f32 %v1535_v20, %v1038_v22 }
 0x901   : > { %v1138_v18 = vadd.f32 %v1134_v25, %v1044_v24 }
 0x903   : > { %1140 = vst.msk [vmem:[%s284_s15 + $0x8] sm:$0xff] %vm416_vm5, %v1138_v18 }
 0x904   : > { %1549 = shalt.err (!%p1546_p3)
}
 0x905   : > { %s1550_s20 = scalar_lea.hbm %s1861_s21, 256  ;;  %s1554_s14 = scalar_lea.hbm %s1914_s7, 512 }
 0x906   : > { %p1551_p4 = scmp.ne.s32.totalorder %s1861_s21, %s1550_s20  ;;  %p1555_p9 = scmp.lt.u32.totalorder %s1861_s21, %s1914_s7 }
 0x907   : > { %p1556_p10 = scmp.lt.u32.totalorder %s1554_s14, %s1550_s20  ;;  %p1558_p12 = scmp.lt.u32.totalorder %s1550_s20, %s1861_s21 }
 0x908   : > { %p1552_p7 = pnand %p1551_p4, %p1693_p5 }
 0x909   : > { %p1557_p11 = por %p1556_p10, %p1555_p9 }
 0x90a   : > { %p1553_p8 = pneg %p1552_p7 }
 0x90b   : > { %p1559_p13 = por %p1558_p12, %p1557_p11 }
 0x90d   : > { %p1560_p0 = pnand %p1559_p13, %p1553_p8 }
 0x90f   : > { %1563 = shalt.err (!%p1560_p0)
}
 0x910   : > { %s1613_s13 = smov 128   ;;  %s1614_s18 = smov 8  }
 0x911   : > { %1420 = dma.vmem_to_hbm [thread:$0]  (%p1693_p5), %s1863_s16, 256, %s1861_s21, %s1866_s22, %s1613_s13, %s1613_s13, %s1614_s18  }
 0x912 PF: > { %p1426_p1 = scmp.ge.s32.totalorder %s1598_s27, 2  ;;  %s1170_s28 = sand.u32 1, %s1586_s24  }
 0x913   : > { %s1171_s23 = scalar_lea.sflag [#allocation3], %s1170_s28 }
 0x914   : > { %p1423_p2 = pnand %p1426_p1, %p1697_p6 }
 0x916   : > { %1581 = dma.done.wait (!%p1423_p2), %s1171_s23, 256  }
 0x917   : > { %1583 = vsyncadd (!%p1423_p2), %s1171_s23, 4294967040  ;;  %p17_p3 = scmp.ge.s32.totalorder %s1680_s30, 4   ;;  %s1917_s24 = smov %s1590_s25 }
 0x918   : > { %s1918_s25 = smov %s1594_s26  ;;  %s1919_s26 = smov %s1691_s10 }
 0x919   : > { %s1920_s27 = smov %s1680_s30  ;;  %19 = sbr.rel (!%p17_p3) target bundleno = 3 (0x3), region = 86 }
 0x920   :  { %1176 = vsyncpa [#allocation3], 1 }
 0x921   :  { %1178 = vsyncpa [#allocation3 + $0x1], 1 }

</bundles_post_ra>
